<compile_context>
chip_gen: v7x
topology: tpu7x:2x2x1
jax: 0.10.0
libtpu: 0.0.40
codegen_flags: <defaults>
</compile_context>

<pallas_src>
import jax
import jax.numpy as jnp
from jax.experimental import pallas as pl
from jax.experimental.pallas import tpu as pltpu

EPS = 1e-5  # nn.LayerNorm default
_MIB = 1024 * 1024


def add_norm_kernel(x1_ref, x2_ref, g_ref, b_ref, o_ref):
    # Residual add, accumulate in fp32 (works for fp32 or bf16 I/O).
    x = x1_ref[...].astype(jnp.float32) + x2_ref[...].astype(jnp.float32)
    inv_d = jnp.float32(1.0 / x.shape[-1])

    # Two-pass (centered) statistics: numerically matches torch.nn.LayerNorm
    # and avoids E[x^2]-mean^2 cancellation.  Both reductions are XLU work in
    # a memory-bound kernel, so the extra pass is free.
    mean = jnp.sum(x, axis=-1, keepdims=True) * inv_d           # (tile, 1)
    xc = x - mean                                               # (tile, d)
    var = jnp.sum(xc * xc, axis=-1, keepdims=True) * inv_d      # biased, like torch
    inv = jax.lax.rsqrt(jnp.maximum(var, 0.0) + EPS)            # (tile, 1)

    g = g_ref[...].astype(jnp.float32)                          # (1, d)
    b = b_ref[...].astype(jnp.float32)                          # (1, d)

    o_ref[...] = (xc * inv * g + b).astype(o_ref.dtype)


def _vmem_limit_bytes():
    """Per-generation scoped-VMEM request: ~3/4 of physical, capped at 96 MiB.

    v5e/v6e (128 MiB physical) -> 96 MiB; v7x (64 MiB per TensorCore) -> 48 MiB.
    Falls back to 48 MiB (safe everywhere) if the hardware query is unavailable.
    """
    try:
        cap = int(pltpu.get_tpu_info().vmem_capacity_bytes)
        if cap > 0:
            return int(min(cap * 3 // 4, 96 * _MIB))
    except Exception:
        pass
    return 48 * _MIB


def _round8(n):
    return max(8, (n // 8) * 8)


def _pick_tile_rows(rows, d_model, itemsize, vmem_limit):
    """Row tile (multiple of 8) sized by bytes-per-step and the VMEM budget."""
    rows8 = ((rows + 7) // 8) * 8

    # VMEM cap per grid step: (2 in + 1 out) double-buffered at the I/O dtype
    # plus ~2 fp32 streaming temporaries (x and centered x) inside the kernel.
    vmem_per_row = d_model * (3 * 2 * itemsize + 2 * 4)
    vmem_cap = _round8(int(vmem_limit * 0.7) // max(vmem_per_row, 1))

    # Bytes-per-step target: ~8 MiB of HBM I/O per grid step keeps the
    # ~0.35us/step overhead amortized (past the measured roofline knee) on
    # every generation, independent of d_model.
    io_per_row = 3 * d_model * itemsize
    target = _round8(-(-(8 * _MIB) // max(io_per_row, 1)))

    tile = min(target, vmem_cap)

    # Megacore: keep >= 2 tiles so the "parallel" axis can be sharded across
    # v7x's two TensorCores (one extra grid step elsewhere is negligible).
    if rows8 >= 16:
        tile = min(tile, _round8(rows8 // 2))

    tile = min(tile, rows8)  # don't over-allocate for tiny problems
    return max(8, tile)


def add_norm(x1, x2, gamma, beta, *, tile_rows=None):
    assert x1.shape == x2.shape, "residual inputs must have identical shapes"
    d_model = x1.shape[-1]
    lead = x1.shape[:-1]
    rows = 1
    for s in lead:
        rows *= s

    vmem_limit = _vmem_limit_bytes()
    if tile_rows is None:
        tile_rows = _pick_tile_rows(
            rows, d_model, jnp.dtype(x1.dtype).itemsize, vmem_limit
        )
    assert tile_rows % 8 == 0, "tile_rows must be a multiple of 8 (sublane tiling)"

    x1f = x1.reshape(rows, d_model)
    x2f = x2.reshape(rows, d_model)
    g2 = gamma.reshape(1, d_model)
    b2 = beta.reshape(1, d_model)

    # No padding / slicing: the grid over-covers ragged row counts and Pallas
    # handles the partial last block (padded reads, masked OOB stores).
    num_tiles = pl.cdiv(rows, tile_rows)

    # TODO(synk): if d_model is ever not a multiple of 128, pad/mask the lane
    # dim in the wrapper to avoid masked vst partial stores (perf-only; 512 ok).
    out = pl.pallas_call(
        add_norm_kernel,
        out_shape=jax.ShapeDtypeStruct((rows, d_model), x1.dtype),
        grid_spec=pltpu.PrefetchScalarGridSpec(
            num_scalar_prefetch=0,
            grid=(num_tiles,),
            in_specs=[
                pl.BlockSpec((tile_rows, d_model), lambda i: (i, 0)),
                pl.BlockSpec((tile_rows, d_model), lambda i: (i, 0)),
                # gamma/beta: constant index_map -> resident across grid steps
                pl.BlockSpec((1, d_model), lambda i: (0, 0)),
                pl.BlockSpec((1, d_model), lambda i: (0, 0)),
            ],
            out_specs=pl.BlockSpec((tile_rows, d_model), lambda i: (i, 0)),
        ),
        compiler_params=pltpu.CompilerParams(
            dimension_semantics=("parallel",),
            vmem_limit_bytes=vmem_limit,
        ),
    )(x1f, x2f, g2, b2)

    return out.reshape(*lead, d_model)


def _reference(x1, x2, gamma, beta):
    x = (x1 + x2).astype(jnp.float32)
    mean = jnp.mean(x, axis=-1, keepdims=True)
    var = jnp.mean((x - mean) ** 2, axis=-1, keepdims=True)
    return (x - mean) * jax.lax.rsqrt(var + EPS) * gamma + beta


if __name__ == "__main__":
    d_model = 512
    batch, seq = 2, 8

    key = jax.random.PRNGKey(0)
    k1, k2, k3, k4 = jax.random.split(key, 4)
    x1 = jax.random.normal(k1, (batch, seq, d_model), dtype=jnp.float32)
    x2 = jax.random.normal(k2, (batch, seq, d_model), dtype=jnp.float32)
    # non-trivial affine params to exercise the gamma/beta path
    gamma = 1.0 + 0.1 * jax.random.normal(k3, (d_model,), dtype=jnp.float32)
    beta = 0.1 * jax.random.normal(k4, (d_model,), dtype=jnp.float32)

    out = jax.block_until_ready(add_norm(x1, x2, gamma, beta))
    ref = _reference(x1, x2, gamma, beta)
    assert jnp.allclose(out, ref, atol=1e-4, rtol=1e-4), "mismatch vs reference"

    # second check: row count not a tile multiple -> partial last block path
    k5, k6 = jax.random.split(k4)
    y1 = jax.random.normal(k5, (3, 5, d_model), dtype=jnp.float32)
    y2 = jax.random.normal(k6, (3, 5, d_model), dtype=jnp.float32)
    out2 = jax.block_until_ready(add_norm(y1, y2, gamma, beta))
    ref2 = _reference(y1, y2, gamma, beta)
    assert jnp.allclose(out2, ref2, atol=1e-4, rtol=1e-4), "mismatch (ragged rows)"

    print("KERNEL_OK")
</pallas_src>

<mosaic_0001>
module attributes {stable_mosaic.version = 11 : i64} {
  func.func @add_norm_kernel(%arg0: i32, %arg1: memref<8x512xf32, #tpu.memory_space<vmem>>, %arg2: memref<8x512xf32, #tpu.memory_space<vmem>>, %arg3: memref<1x512xf32, #tpu.memory_space<vmem>>, %arg4: memref<1x512xf32, #tpu.memory_space<vmem>>, %arg5: memref<8x512xf32, #tpu.memory_space<vmem>>) attributes {dimension_semantics = [#tpu.dimension_semantics<parallel>], iteration_bounds = array<i64: 2>, scalar_prefetch = 0 : i64, scratch_operands = 0 : i64, tpu.core_type = #tpu.core_type<tc>, window_params = [{transform_indices = @transform_0, window_bounds = array<i64: 8, 512>}, {transform_indices = @transform_1, window_bounds = array<i64: 8, 512>}, {pipeline_mode = #tpu.pipeline_mode<synchronous>, transform_indices = @transform_2, window_bounds = array<i64: 1, 512>}, {pipeline_mode = #tpu.pipeline_mode<synchronous>, transform_indices = @transform_3, window_bounds = array<i64: 1, 512>}, {transform_indices = @transform_4, window_bounds = array<i64: 8, 512>}]} {
    %c0 = arith.constant 0 : index
    %c0_0 = arith.constant 0 : index
    %0 = vector.load %arg1[%c0, %c0_0] : memref<8x512xf32, #tpu.memory_space<vmem>>, vector<8x512xf32>
    %c0_1 = arith.constant 0 : index
    %c0_2 = arith.constant 0 : index
    %1 = vector.load %arg2[%c0_1, %c0_2] : memref<8x512xf32, #tpu.memory_space<vmem>>, vector<8x512xf32>
    %2 = arith.addf %0, %1 : vector<8x512xf32>
    %cst = arith.constant dense<0.000000e+00> : vector<8xf32>
    %3 = vector.multi_reduction <add>, %2, %cst [1] : vector<8x512xf32> to vector<8xf32>
    %4 = vector.shape_cast %3 : vector<8xf32> to vector<8x1xf32>
    %cst_3 = arith.constant 0.001953125 : f32
    %5 = vector.broadcast %cst_3 : f32 to vector<8x1xf32>
    %6 = arith.mulf %4, %5 : vector<8x1xf32>
    %7 = vector.broadcast %6 : vector<8x1xf32> to vector<8x512xf32>
    %8 = arith.subf %2, %7 : vector<8x512xf32>
    %9 = arith.mulf %8, %8 : vector<8x512xf32>
    %cst_4 = arith.constant dense<0.000000e+00> : vector<8xf32>
    %10 = vector.multi_reduction <add>, %9, %cst_4 [1] : vector<8x512xf32> to vector<8xf32>
    %11 = vector.shape_cast %10 : vector<8xf32> to vector<8x1xf32>
    %cst_5 = arith.constant 0.001953125 : f32
    %12 = vector.broadcast %cst_5 : f32 to vector<8x1xf32>
    %13 = arith.mulf %11, %12 : vector<8x1xf32>
    %cst_6 = arith.constant 0.000000e+00 : f32
    %14 = vector.broadcast %cst_6 : f32 to vector<8x1xf32>
    %15 = arith.maximumf %13, %14 : vector<8x1xf32>
    %cst_7 = arith.constant 9.99999974E-6 : f32
    %16 = vector.broadcast %cst_7 : f32 to vector<8x1xf32>
    %17 = arith.addf %15, %16 : vector<8x1xf32>
    %18 = math.rsqrt %17 : vector<8x1xf32>
    %c0_8 = arith.constant 0 : index
    %c0_9 = arith.constant 0 : index
    %19 = vector.load %arg3[%c0_8, %c0_9] : memref<1x512xf32, #tpu.memory_space<vmem>>, vector<1x512xf32>
    %c0_10 = arith.constant 0 : index
    %c0_11 = arith.constant 0 : index
    %20 = vector.load %arg4[%c0_10, %c0_11] : memref<1x512xf32, #tpu.memory_space<vmem>>, vector<1x512xf32>
    %21 = vector.broadcast %18 : vector<8x1xf32> to vector<8x512xf32>
    %22 = arith.mulf %8, %21 : vector<8x512xf32>
    %23 = vector.broadcast %19 : vector<1x512xf32> to vector<8x512xf32>
    %24 = arith.mulf %22, %23 : vector<8x512xf32>
    %25 = vector.broadcast %20 : vector<1x512xf32> to vector<8x512xf32>
    %26 = arith.addf %24, %25 : vector<8x512xf32>
    %c0_12 = arith.constant 0 : index
    %c0_13 = arith.constant 0 : index
    %27 = vector.load %arg5[%c0_12, %c0_13] : memref<8x512xf32, #tpu.memory_space<vmem>>, vector<8x512xf32>
    tpu.vector_store %arg5[%c0_12, %c0_13], %26 {strides = array<i32>} : memref<8x512xf32, #tpu.memory_space<vmem>>, vector<8x512xf32>,
    return
  }
  func.func @transform_0(%arg0: i32) -> (i32, i32) {
    %c0_i32 = arith.constant 0 : i32
    %c0_i32_0 = arith.constant 0 : i32
    return %arg0, %c0_i32 : i32, i32
  }
  func.func @transform_1(%arg0: i32) -> (i32, i32) {
    %c0_i32 = arith.constant 0 : i32
    %c0_i32_0 = arith.constant 0 : i32
    return %arg0, %c0_i32 : i32, i32
  }
  func.func @transform_2(%arg0: i32) -> (i32, i32) {
    %c0_i32 = arith.constant 0 : i32
    %c0_i32_0 = arith.constant 0 : i32
    %c0_i32_1 = arith.constant 0 : i32
    return %c0_i32, %c0_i32_0 : i32, i32
  }
  func.func @transform_3(%arg0: i32) -> (i32, i32) {
    %c0_i32 = arith.constant 0 : i32
    %c0_i32_0 = arith.constant 0 : i32
    %c0_i32_1 = arith.constant 0 : i32
    return %c0_i32, %c0_i32_0 : i32, i32
  }
  func.func @transform_4(%arg0: i32) -> (i32, i32) {
    %c0_i32 = arith.constant 0 : i32
    %c0_i32_0 = arith.constant 0 : i32
    return %arg0, %c0_i32 : i32, i32
  }
}

</mosaic_0001>

<bundles_post_ra>
// kernel: tpu_custom_call.1
= control target key start
LH: loop header
LB: loop body
LE: loop exit
PB: predicated region body
PF: predicated region fallthrough
CT: control target
= control target key end

     0   :  { %9 = vsyncpa [#allocation3], 0  ;;  %s909_s0 = inlined_call_operand.hbm [shape: f32[16,512], index: 0, kind: input, shape index: {}]   ;;  %s910_s1 = inlined_call_operand.hbm [shape: f32[16,512], index: 1, kind: input, shape index: {}]   ;;  %s911_s2 = inlined_call_operand.vmem [shape: f32[1,512], index: 2, kind: input, shape index: {}]   ;;  %s912_s3 = inlined_call_operand.vmem [shape: f32[1,512], index: 3, kind: input, shape index: {}]   ;;  %s913_s4 = inlined_call_operand.hbm [shape: f32[16,512], index: 4, kind: output, shape index: {}]  }
   0x1   :  { %11 = vsyncpa [#allocation3 + $0x1], 0 }
   0x2   :  { %12 = vsyncpa [#allocation6], 0 }
   0x3   :  { %14 = vsyncpa [#allocation6 + $0x1], 0 }
   0x4   :  { %15 = vsyncpa [#allocation4], 0 }
   0x5   :  { %17 = vsyncpa [#allocation4 + $0x1], 0  ;;  %s689_s15 = smov 0   ;;  %s691_s16 = smov 0  }
   0x6   :  { %s693_s17 = smov 0   ;;  %s695_s18 = smov 0  }
   0x7 LB: > { %s710_s19 = sadd.s32 4294967295, %s659_s18   ;;  %s455_s20 = sadd.s32 4294967294, %s659_s18   ;;  %s659_s18 = sphi %s695_s18, %s932_s18   ;;  %s655_s17 = sphi %s693_s17, %s931_s17   ;;  %s651_s16 = sphi %s691_s16, %s930_s16   ;;  %s647_s15 = sphi %s689_s15, %s929_s15  }
   0x8   : > { %s714_s21 = sadd.s32 1, %s659_s18   ;;  %s30_s22 = sadd.s32 1, %s655_s17 }
   0x9   : > { %s27_s23 = ssub.s32 %s659_s18, %s714_s21  ;;  %p37_p0 = scmp.ne.s32.totalorder %s655_s17, %s651_s16 }
   0xa   : > { %p28_p1 = scmp.eq.s32.totalorder %s27_s23, 0  ;;  %p38_p2 = scmp.eq.s32.totalorder %s659_s18, 0 }
   0xb   : > { %p43_p3 = scmp.ne.s32.totalorder %s651_s16, %s647_s15  ;;  %p44_p4 = scmp.eq.s32.totalorder %s710_s19, 0 }
   0xc   : > { %s726_s24 = scalar_select %p28_p1, %s655_s17, %s30_s22  }
   0xd   : > { %p728_p5 = por %p38_p2, %p37_p0  ;;  %p732_p6 = por %p44_p4, %p43_p3 }
   0xe   : > { %p135_p7 = scmp.eq.s32.totalorder %s710_s19, 1  ;;  %p141_p8 = scmp.eq.s32.totalorder %s455_s20, 1 }
   0xf   : > { %s917_s26 = scalar_select %p732_p6, 1, 0 }
  0x10   : > { %p493_p10 = scmp.lt.s32.totalorder %s659_s18, 2  ;;  %p739_p11 = por %p135_p7, %p37_p0 }
  0x11   : > { %p743_p12 = por %p141_p8, %p43_p3  ;;  %s748_s29 = sand.u32 1, %s655_s17  }
  0x12   : > { %s918_s27 = scalar_select %p739_p11, 1, 0 }
  0x13   : > { %s919_s28 = scalar_select %p743_p12, 1, 0 }
  0x14   : > { %s473_s30 = sshll.u32 %s659_s18, 9  ;;  %s458_s5 = sshll.u32 %s748_s29, 5 }
  0x15   : > { %s757_s8 = scalar_lea.hbm %s909_s0, %s473_s30  ;;  %s171_s9 = scalar_lea.vmem [#allocation2], %s458_s5 }
  0x16   : > { %s179_s10 = sshll.u32 %s171_s9, 4  ;;  %p763_p13 = pnand %p493_p10, %p728_p5  ;;  %s767_s10 = int_to_ptr.vmem [resolvable:$true] %s179_s10 }
  0x17   : > { %s168_s12 = scalar_lea.sflag [#allocation3], %s748_s29  ;;  %s529_s13 = scalar_lea.hbm %s757_s8, 512 }
  0x18   : > { %p530_p2 = scmp.ne.s32.totalorder %s757_s8, %s529_s13  ;;  %p531_p3 = pneg %p763_p13 }
  0x19   : > { %s534_s22 = scalar_lea.hbm %s909_s0, 1024  ;;  %p535_p5 = scmp.lt.u32.totalorder %s757_s8, %s909_s0 }
  0x1a   : > { %p532_p4 = pnand %p531_p3, %p530_p2  ;;  %p536_p8 = scmp.lt.u32.totalorder %s534_s22, %s529_s13 }
  0x1b   : > { %p538_p9 = scmp.lt.u32.totalorder %s529_s13, %s757_s8 }
  0x1c   : > { %p533_p7 = pneg %p532_p4  ;;  %p537_p10 = por %p536_p8, %p535_p5 }
  0x1e   : > { %p539_p0 = por %p538_p9, %p537_p10 }
  0x20   : > { %p540_p1 = pnand %p539_p0, %p533_p7 }
  0x22   : > { %543 = shalt.err (!%p540_p1)
}
  0x23   : > { %s544_s6 = scalar_lea.vmem %s767_s10, 512  ;;  %s661_s7 = smov [#allocation2]  }
  0x24   : > { %p545_p2 = scmp.ne.s32.totalorder %s767_s10, %s544_s6  ;;  %s549_s9 = sshll.u32 %s661_s7, 4  ;;  %s550_s9 = int_to_ptr.vmem [resolvable:$false] %s549_s9 }
  0x25   : > { %s551_s14 = scalar_lea.vmem %s550_s9, 1024  ;;  %p552_p11 = scmp.lt.s32.totalorder %s767_s10, %s550_s9 }
  0x26   : > { %p547_p4 = pnand %p545_p2, %p531_p3  ;;  %p553_p5 = scmp.lt.s32.totalorder %s551_s14, %s544_s6 }
  0x28   : > { %p548_p12 = pneg %p547_p4  ;;  %p554_p8 = por %p553_p5, %p552_p11 }
  0x2a   : > { %p555_p9 = pnand %p554_p8, %p548_p12 }
  0x2c   : > { %558 = shalt.err (!%p555_p9)
}
  0x2d   : > { %485 = dma.hbm_to_vmem [thread:$0]  (!%p763_p13), %s757_s8, 512, %s767_s10, %s168_s12  }
  0x2e   : > { %p921_p0 = scmp.lt.s32.totalorder %s659_s18, 3  ;;  %p922_p1 = scmp.ge.s32.totalorder %s659_s18, 1 }
  0x2f   : > { %s810_s23 = scalar_lea.hbm %s910_s1, %s473_s30  ;;  %s190_s25 = scalar_lea.vmem [#allocation5], %s458_s5 }
  0x30   : > { %p801_p7 = pnand %p922_p1, %p921_p0  ;;  %s198_s6 = sshll.u32 %s190_s25, 4  ;;  %s199_s6 = int_to_ptr.vmem [resolvable:$true] %s198_s6 }
  0x31   : > { %s187_s8 = scalar_lea.sflag [#allocation6], %s748_s29  ;;  %s559_s10 = scalar_lea.hbm %s810_s23, 512 }
  0x32   : > { %s923_s13 = scalar_select %p801_p7, 1, 0 }
  0x33   : > { %p560_p11 = scmp.ne.s32.totalorder %s810_s23, %s559_s10  ;;  %s564_s30 = scalar_lea.hbm %s910_s1, 1024 }
  0x34   : > { %p565_p2 = scmp.lt.u32.totalorder %s810_s23, %s910_s1  ;;  %p566_p4 = scmp.lt.u32.totalorder %s564_s30, %s559_s10 }
  0x35   : > { %p562_p12 = pnand %p560_p11, %p531_p3  ;;  %p568_p8 = scmp.lt.u32.totalorder %s559_s10, %s810_s23 }
  0x36   : > { %p567_p5 = por %p566_p4, %p565_p2 }
  0x37   : > { %p563_p10 = pneg %p562_p12 }
  0x38   : > { %p569_p9 = por %p568_p8, %p567_p5 }
  0x3a   : > { %p570_p0 = pnand %p569_p9, %p563_p10 }
  0x3c   : > { %573 = shalt.err (!%p570_p0)
}
  0x3d   : > { %s574_s29 = scalar_lea.vmem %s199_s6, 512  ;;  %s662_s5 = smov [#allocation5]  }
  0x3e   : > { %p575_p1 = scmp.ne.s32.totalorder %s199_s6, %s574_s29  ;;  %s579_s20 = sshll.u32 %s662_s5, 4  ;;  %s580_s20 = int_to_ptr.vmem [resolvable:$false] %s579_s20 }
  0x3f   : > { %s581_s22 = scalar_lea.vmem %s580_s20, 1024  ;;  %p582_p6 = scmp.lt.s32.totalorder %s199_s6, %s580_s20 }
  0x40   : > { %p577_p11 = pnand %p575_p1, %p531_p3  ;;  %p583_p7 = scmp.lt.s32.totalorder %s581_s22, %s574_s29 }
  0x42   : > { %p578_p12 = pneg %p577_p11  ;;  %p584_p2 = por %p583_p7, %p582_p6 }
  0x44   : > { %p585_p4 = pnand %p584_p2, %p578_p12 }
  0x46   : > { %588 = shalt.err (!%p585_p4)
}
  0x47   : > { %488 = dma.hbm_to_vmem [thread:$0]  (!%p763_p13), %s810_s23, 512, %s199_s6, %s187_s8  }
  0x48   : > { %p924_p10 = scmp.ne.s32.totalorder %s923_s13, 0 }
  0x49   : > { %s837_s25 = sand.u32 (!%p924_p10), 1, %s651_s16   ;;  %p925_p6 = scmp.ne.s32.totalorder (!%p924_p10), %s917_s26, 0 }
  0x4a   : > { %207 = sbr.rel (%p924_p10) target bundleno = 429 (0x1ad), region = 36  ;;  %s840_s10 = sshll.u32 (!%p924_p10), %s837_s25, 5 }
  0x4b   : > { %s210_s12 = scalar_lea.sflag (!%p924_p10), [#allocation3], %s837_s25  ;;  %s213_s7 = scalar_lea.vmem (!%p924_p10), [#allocation2], %s840_s10 }
  0x51   : > { %634 = dma.done.wait (%p925_p6), %s210_s12, 512  }
  0x52   : > { %636 = vsyncadd (%p925_p6), %s210_s12, 4294966784  ;;  %s219_s11 = scalar_lea.sflag [#allocation6], %s837_s25  ;;  %s222_s13 = scalar_lea.vmem [#allocation5], %s840_s10 }
  0x53   : > { %638 = dma.done.wait (%p925_p6), %s219_s11, 512  }
  0x54   : > { %640 = vsyncadd (%p925_p6), %s219_s11, 4294966784  ;;  %v252_v0 = vld [vmem:[%s213_s7] sm:$0xff]  ;;  %v253_v1 = vld [vmem:[%s213_s7 + $0x8] sm:$0xff]  ;;  %v294_v31 = vlaneseq  ;;  %s475_s30 = sshll.u32 %s710_s19, 9  ;;  %s251_s9 = scalar_lea.vmem [#allocation7], %s840_s10 }
  0x55   : > { %v254_v2 = vld [vmem:[%s213_s7 + $0x10] sm:$0xff]  ;;  %v255_v3 = vld [vmem:[%s213_s7 + $0x18] sm:$0xff]  ;;  %v256_v4 = vld [vmem:[%s222_s13] sm:$0xff]  ;;  %s362_s14 = sshll.u32 %s251_s9, 4  ;;  %s865_s20 = scalar_lea.hbm %s913_s4, %s475_s30  ;;  %s867_s14 = int_to_ptr.vmem [resolvable:$true] %s362_s14 }
  0x56   : > { %v257_v5 = vld [vmem:[%s222_s13 + $0x8] sm:$0xff]  ;;  %v258_v6 = vld [vmem:[%s222_s13 + $0x10] sm:$0xff]  ;;  %v259_v7 = vld [vmem:[%s222_s13 + $0x18] sm:$0xff]  ;;  %v260_v8 = vadd.f32 %v256_v4, %v252_v0  ;;  %v295_v33 = vshrl.u32 %v294_v31, 7  ;;  %s348_s19 = scalar_lea.sflag [#allocation4], %s837_s25  ;;  %s589_s22 = scalar_lea.vmem %s867_s14, 512 }
  0x57   : > { %v261_v9 = vadd.f32 %v257_v5, %v253_v1  ;;  %v262_v10 = vadd.f32 %v258_v6, %v254_v2  ;;  %v263_v11 = vadd.f32 %v259_v7, %v255_v3  ;;  %v287_v38 = vld [vmem:[%s911_s2] sm:$0xf]  ;;  %p590_p13 = scmp.ne.s32.totalorder %s867_s14, %s589_s22  ;;  %p926_p3 = scmp.ne.s32.totalorder %s918_s27, 0 }
  0x58   : > { %v296_v34 = vsub.s32 0, %v295_v33  ;;  %v300_v35 = vsub.s32 1, %v295_v33  ;;  %v304_v36 = vsub.s32 2, %v295_v33  ;;  %v308_v37 = vsub.s32 3, %v295_v33  ;;  %v288_v39 = vld [vmem:[%s912_s3] sm:$0xf] }
  0x59   : > { %v264_v12 = vadd.f32 %v261_v9, %v260_v8  ;;  %p591_p7 = pnand %p590_p13, %p926_p3  ;;  %s663_s10 = smov [#allocation7]  }
  0x5a   : > { %v297_v40 = vrot.slane %v287_v38, %v296_v34  ;;  %v301_v41 = vrot.slane %v287_v38, %v300_v35  ;;  %v305_v42 = vrot.slane %v287_v38, %v304_v36  ;;  %v309_v43 = vrot.slane %v287_v38, %v308_v37  ;;  %s593_s12 = sshll.u32 %s663_s10, 4  ;;  %s594_s12 = int_to_ptr.vmem [resolvable:$false] %s593_s12 }
  0x5b   : > { %v265_v13 = vadd.f32 %v264_v12, %v262_v10  ;;  %v322_v45 = vrot.slane %v288_v39, %v296_v34  ;;  %v326_v46 = vrot.slane %v288_v39, %v300_v35  ;;  %v330_v47 = vrot.slane %v288_v39, %v304_v36  ;;  %p592_p5 = pneg %p591_p7  ;;  %s595_s7 = scalar_lea.vmem %s594_s12, 1024 }
  0x5c   : > { %v334_v48 = vrot.slane %v288_v39, %v308_v37  ;;  %p596_p8 = scmp.lt.s32.totalorder %s867_s14, %s594_s12  ;;  %p597_p9 = scmp.lt.s32.totalorder %s595_s7, %s589_s22 }
  0x5d   : > { %v266_v14 = vadd.f32 %v265_v13, %v263_v11 }
  0x5e   : > { %p598_p0 = por %p597_p9, %p596_p8 }
  0x5f   : > { %267 = vadd.xlane.f32.xlu0 %v266_v14 }
  0x60   : > { %p599_p1 = pnand %p598_p0, %p592_p5 }
  0xec   : > { %v268_v15 = vpop.xlane.xlu0 %267 }
  0xed   : > { %v269_v16 = vmul.f32 0.001953125, %v268_v15 }
  0xef   : > { %v270_v17 = vsub.f32 %v260_v8, %v269_v16  ;;  %v271_v18 = vsub.f32 %v261_v9, %v269_v16  ;;  %v272_v19 = vsub.f32 %v262_v10, %v269_v16  ;;  %v273_v20 = vsub.f32 %v263_v11, %v269_v16 }
  0xf1   : > { %v274_v21 = vmul.f32 %v270_v17, %v270_v17  ;;  %v275_v22 = vmul.f32 %v271_v18, %v271_v18  ;;  %v276_v23 = vmul.f32 %v272_v19, %v272_v19  ;;  %v277_v25 = vmul.f32 %v273_v20, %v273_v20 }
  0xf3   : > { %v278_v24 = vadd.f32 %v275_v22, %v274_v21 }
  0xf5   : > { %v279_v26 = vadd.f32 %v278_v24, %v276_v23 }
  0xf7   : > { %v280_v27 = vadd.f32 %v279_v26, %v277_v25 }
  0xf9   : > { %281 = vadd.xlane.f32.xlu0 %v280_v27 }
 0x186   : > { %v282_v28 = vpop.xlane.xlu0 %281 }
 0x187   : > { %v283_v29 = vmul.f32 0.001953125, %v282_v28 }
 0x189   : > { %v284_v30 = vmax.f32 %v283_v29, 0.0 }
 0x18b   : > { %v285_v32 = vadd.f32 1e-05, %v284_v30 }
 0x18d   : > { %527 = vrsqrt.f32 %v285_v32 }
 0x197   : > { %v528_v44 = vpop.eup %527 }
 0x198   : > { %v289_v49 = vmul.f32 %v528_v44, %v270_v17  ;;  %v290_v50 = vmul.f32 %v528_v44, %v271_v18  ;;  %v291_v51 = vmul.f32 %v528_v44, %v272_v19  ;;  %v292_v52 = vmul.f32 %v528_v44, %v273_v20 }
 0x19a   : > { %v314_v53 = vmul.f32 %v297_v40, %v289_v49  ;;  %v315_v54 = vmul.f32 %v301_v41, %v290_v50  ;;  %v316_v55 = vmul.f32 %v305_v42, %v291_v51  ;;  %v317_v56 = vmul.f32 %v309_v43, %v292_v52 }
 0x19c   : > { %v339_v57 = vadd.f32 %v322_v45, %v314_v53  ;;  %v340_v58 = vadd.f32 %v326_v46, %v315_v54  ;;  %v341_v59 = vadd.f32 %v330_v47, %v316_v55  ;;  %v342_v60 = vadd.f32 %v334_v48, %v317_v56 }
 0x19e   : > { %343 = vst [vmem:[%s251_s9] sm:$0xff] %v339_v57  ;;  %344 = vst [vmem:[%s251_s9 + $0x8] sm:$0xff] %v340_v58 }
 0x19f   : > { %345 = vst [vmem:[%s251_s9 + $0x10] sm:$0xff] %v341_v59  ;;  %346 = vst [vmem:[%s251_s9 + $0x18] sm:$0xff] %v342_v60 }
 0x1a0   : > { %602 = shalt.err (!%p599_p1)
}
 0x1a1   : > { %s603_s25 = scalar_lea.hbm %s865_s20, 512  ;;  %s607_s26 = scalar_lea.hbm %s913_s4, 1024 }
 0x1a2   : > { %p604_p11 = scmp.ne.s32.totalorder %s865_s20, %s603_s25  ;;  %p608_p4 = scmp.lt.u32.totalorder %s865_s20, %s913_s4 }
 0x1a3   : > { %p609_p10 = scmp.lt.u32.totalorder %s607_s26, %s603_s25  ;;  %p611_p13 = scmp.lt.u32.totalorder %s603_s25, %s865_s20 }
 0x1a4   : > { %p605_p12 = pnand %p604_p11, %p926_p3 }
 0x1a5   : > { %p610_p6 = por %p609_p10, %p608_p4 }
 0x1a6   : > { %p606_p2 = pneg %p605_p12 }
 0x1a7   : > { %p612_p7 = por %p611_p13, %p610_p6 }
 0x1a9   : > { %p613_p5 = pnand %p612_p7, %p606_p2 }
 0x1ab   : > { %616 = shalt.err (!%p613_p5)
}
 0x1ac   : > { %480 = dma.vmem_to_hbm [thread:$0]  (%p926_p3), %s867_s14, 512, %s865_s20, %s348_s19  }
 0x1ad PF: > { %s374_s8 = sand.u32 1, %s647_s15   ;;  %p927_p8 = scmp.ne.s32.totalorder %s919_s28, 0 }
 0x1ae   : > { %p928_p9 = scmp.ge.s32.totalorder %s659_s18, 2  ;;  %s375_s30 = scalar_lea.sflag [#allocation4], %s374_s8 }
 0x1b0   : > { %p490_p0 = pnand %p928_p9, %p927_p8 }
 0x1b2   : > { %642 = dma.done.wait (!%p490_p0), %s375_s30, 512  }
 0x1b3   : > { %644 = vsyncadd (!%p490_p0), %s375_s30, 4294966784  ;;  %p20_p1 = scmp.ge.s32.totalorder %s714_s21, 4   ;;  %s929_s15 = smov %s651_s16 }
 0x1b4   : > { %s930_s16 = smov %s655_s17  ;;  %s931_s17 = smov %s726_s24 }
 0x1b5   : > { %s932_s18 = smov %s714_s21  ;;  %22 = sbr.rel (!%p20_p1) target bundleno = 7 (0x7), region = 94 }
 0x1bc   :  { %380 = vsyncpa [#allocation3], 1 }
 0x1bd   :  { %382 = vsyncpa [#allocation3 + $0x1], 1 }
 0x1be   :  { %383 = vsyncpa [#allocation6], 1 }
 0x1bf   :  { %385 = vsyncpa [#allocation6 + $0x1], 1 }
 0x1c0   :  { %386 = vsyncpa [#allocation4], 1 }
 0x1c1   :  { %388 = vsyncpa [#allocation4 + $0x1], 1 }

</bundles_post_ra>
